<compile_context>
chip_gen: v5e
topology: v5e:2x2
jax: 0.10.0
libtpu: 0.0.40
codegen_flags: <defaults>
</compile_context>

<pallas_src>
import jax
import jax.numpy as jnp
from jax.experimental import pallas as pl
from jax.experimental.pallas import tpu as pltpu


C_PAD = 128  # every feature / class dimension is padded to one full lane group


def _round_up(n, m):
    return ((n + m - 1) // m) * m


# ---------------------------------------------------------------------------
# Per-layer kernel: tiled (adj @ x) accumulation + fused transform epilogue
# ---------------------------------------------------------------------------
def _make_layer_kernel(apply_relu, apply_log_softmax, class_num):
    """Kernel over grid (n_tgt_tiles, n_src_tiles); src axis is the reduction."""

    def kernel(x_src_ref, x_tgt_ref, adj_ref, w_ref, b_ref, o_ref, acc_ref):
        k = pl.program_id(1)

        @pl.when(k == 0)
        def _():
            acc_ref[...] = jnp.zeros_like(acc_ref)

        # Hyperedge aggregation partial sum on the MXU: (tm, tk) @ (tk, 128).
        acc_ref[...] += jnp.dot(adj_ref[...], x_src_ref[...],
                                preferred_element_type=jnp.float32)

        @pl.when(k == pl.num_programs(1) - 1)
        def _():
            # 256-deep contraction: [agg | x_target] @ [[W], [W_self]].
            cat = jnp.concatenate(
                [acc_ref[...].astype(jnp.bfloat16), x_tgt_ref[...]], axis=-1)
            out = jnp.dot(cat, w_ref[...],
                          preferred_element_type=jnp.float32) + b_ref[...]
            if apply_relu:
                out = jnp.maximum(out, 0.0)
            if apply_log_softmax:
                # Masked row-wise log_softmax over the first `class_num` lanes
                # (rest is zero padding).  f32 epilogue on VPU/EUP.
                lane = jax.lax.broadcasted_iota(jnp.int32, out.shape, 1)
                valid = lane < class_num
                masked = jnp.where(valid, out, -1e30)
                m = jnp.max(masked, axis=-1, keepdims=True)
                s = masked - m
                e = jnp.where(valid, jnp.exp(s), 0.0)
                lse = jnp.log(jnp.sum(e, axis=-1, keepdims=True))
                out = jnp.where(valid, s - lse, 0.0)
            o_ref[...] = out.astype(o_ref.dtype)

    return kernel


def _hyconv_layer(x_arr, n_src, adj, w, w_self, b, *, apply_relu,
                  apply_log_softmax, class_num, tile_m_max, tile_k_max):
    """One HyConvInd layer as a gridded pallas_call. Returns padded output."""
    n_tgt = int(adj.shape[0])

    # Tile sizes (multiples of 128 -> lane/sublane aligned for bf16/f32).
    tm = min(tile_m_max, _round_up(n_tgt, 128))
    tk = min(tile_k_max, _round_up(n_src, 128))
    n_tgt_pad = _round_up(n_tgt, tm)
    n_x_pad = _round_up(max(n_src, n_tgt_pad), tk)

    # Row-pad / trim x to the padded source extent.  Rows >= n_src never
    # influence real outputs (their adj columns are zero).
    rows = x_arr.shape[0]
    if rows < n_x_pad:
        x_arr = jnp.pad(x_arr, ((0, n_x_pad - rows), (0, 0)))
    elif rows > n_x_pad:
        x_arr = x_arr[:n_x_pad]

    adj_pad = jnp.zeros((n_tgt_pad, n_x_pad), jnp.bfloat16)
    adj_pad = adj_pad.at[:n_tgt, :n_src].set(adj.astype(jnp.bfloat16))

    # Stack [W; W_self] into one (256, 128) weight for the 256-deep matmul.
    ci, co = w.shape
    w_cat = jnp.zeros((2 * C_PAD, C_PAD), jnp.float32)
    w_cat = w_cat.at[:ci, :co].set(w)
    w_cat = w_cat.at[C_PAD:C_PAD + ci, :co].set(w_self)
    w_cat = w_cat.astype(jnp.bfloat16)
    b_pad = jnp.zeros((1, C_PAD), jnp.float32).at[0, :co].set(
        jnp.reshape(b, (-1,)))

    out_dtype = jnp.float32 if apply_log_softmax else jnp.bfloat16
    out_itemsize = 4 if apply_log_softmax else 2
    grid = (n_tgt_pad // tm, n_x_pad // tk)

    # VMEM budget: double-buffered streamed tiles + resident weights / acc.
    # Kept explicitly under v7x's 64 MiB physical VMEM.
    vmem_est = (2 * tm * tk * 2            # adj tiles (bf16, double-buffered)
                + 2 * tk * C_PAD * 2       # x source tiles
                + 2 * tm * C_PAD * 2       # x target tiles
                + tm * C_PAD * 4           # f32 accumulator scratch
                + 2 * tm * C_PAD * out_itemsize   # output tiles
                + 2 * C_PAD * C_PAD * 2    # resident [W; W_self]
                + C_PAD * 4)               # bias
    vmem_limit = int(min(60 * 1024 * 1024,
                         max(4 * vmem_est, 16 * 1024 * 1024)))

    flops = (2 * n_tgt_pad * n_x_pad * C_PAD            # adj @ x
             + 2 * n_tgt_pad * (2 * C_PAD) * C_PAD)     # transform
    transc = 2 * n_tgt_pad * C_PAD if apply_log_softmax else 0
    bytes_acc = (n_tgt_pad * n_x_pad * 2 + n_x_pad * C_PAD * 2
                 + n_tgt_pad * C_PAD * 2 + 2 * C_PAD * C_PAD * 2
                 + C_PAD * 4 + n_tgt_pad * C_PAD * out_itemsize)

    kernel = _make_layer_kernel(apply_relu, apply_log_softmax, class_num)
    out = pl.pallas_call(
        kernel,
        out_shape=jax.ShapeDtypeStruct((n_tgt_pad, C_PAD), out_dtype),
        grid_spec=pltpu.PrefetchScalarGridSpec(
            num_scalar_prefetch=0,
            grid=grid,
            in_specs=[
                pl.BlockSpec((tk, C_PAD), lambda i, k: (k, 0)),        # x (src)
                pl.BlockSpec((tm, C_PAD), lambda i, k: (i, 0)),        # x (tgt)
                pl.BlockSpec((tm, tk), lambda i, k: (i, k)),           # adj
                pl.BlockSpec((2 * C_PAD, C_PAD), lambda i, k: (0, 0)),  # [W;Ws]
                pl.BlockSpec((1, C_PAD), lambda i, k: (0, 0)),         # bias
            ],
            out_specs=pl.BlockSpec((tm, C_PAD), lambda i, k: (i, 0)),
            scratch_shapes=[pltpu.VMEM((tm, C_PAD), jnp.float32)],
        ),
        compiler_params=pltpu.CompilerParams(
            dimension_semantics=("parallel", "arbitrary"),
            vmem_limit_bytes=vmem_limit,
        ),
        cost_estimate=pl.CostEstimate(
            flops=int(flops), transcendentals=int(transc),
            bytes_accessed=int(bytes_acc)),
    )(x_arr, x_arr, adj_pad, w_cat, b_pad)
    return out, n_tgt


# ---------------------------------------------------------------------------
# Host-side wrapper (mirrors HyConvInd_ft.forward, eval mode)
# ---------------------------------------------------------------------------
def hyconv_ind_ft_forward(x, H, params, class_num, *,
                          tile_m_max=512, tile_k_max=512):
    n_layers = len(H)
    assert n_layers == len(params)
    assert class_num <= C_PAD

    n0, c0 = x.shape
    assert c0 <= C_PAD
    x_arr = jnp.zeros((n0, C_PAD), jnp.float32).at[:, :c0].set(x)
    x_arr = x_arr.astype(jnp.bfloat16)   # bf16 MXU inputs; f32 accumulation
    n_real = n0

    out = None
    n_tgt_last = None
    for i, (adj, _, size) in enumerate(H):
        n_tgt = int(size[0][0])
        assert n_tgt == adj.shape[0] and adj.shape[1] == n_real
        w, w_self, b = params[i]
        is_last = (i == n_layers - 1)
        # NOTE: the PyTorch code applies relu (+dropout) for every i != 1,
        # INCLUDING the final layer before log_softmax — replicated exactly.
        out, n_tgt_last = _hyconv_layer(
            x_arr, n_real, adj, w, w_self, b,
            apply_relu=(i != 1),
            apply_log_softmax=is_last,
            class_num=class_num,
            tile_m_max=tile_m_max, tile_k_max=tile_k_max)
        x_arr = out
        n_real = n_tgt
    # Slice the valid target rows / class columns (store stayed 128-lane dense).
    return out[:n_tgt_last, :class_num]


# ---------------------------------------------------------------------------
# Pure-JAX reference (identical bf16 casts and matmul ordering)
# ---------------------------------------------------------------------------
def reference_forward(x, H, params, class_num):
    xb = x.astype(jnp.bfloat16)
    out = None
    for i, (adj, _, size) in enumerate(H):
        n_tgt = int(size[0][0])
        w, w_self, b = params[i]
        agg = jnp.dot(adj.astype(jnp.bfloat16), xb,
                      preferred_element_type=jnp.float32)
        out = (jnp.dot(agg.astype(jnp.bfloat16), w.astype(jnp.bfloat16),
                       preferred_element_type=jnp.float32)
               + jnp.dot(xb[:n_tgt], w_self.astype(jnp.bfloat16),
                         preferred_element_type=jnp.float32)
               + b)
        if i != 1:
            out = jnp.maximum(out, 0.0)
        xb = out.astype(jnp.bfloat16)
    return jax.nn.log_softmax(out, axis=-1)


# ---------------------------------------------------------------------------
# Deterministic parameter construction
# ---------------------------------------------------------------------------
def init_params(key, ft_dim, hiddens, class_num):
    dims = [ft_dim] + list(hiddens) + [class_num]
    params = []
    for i in range(len(dims) - 1):
        c_in, c_out = dims[i], dims[i + 1]
        key, k1, k2 = jax.random.split(key, 3)
        scale = 1.0 / jnp.sqrt(jnp.float32(c_in))
        w = jax.random.uniform(k1, (c_in, c_out), jnp.float32,
                               minval=-scale, maxval=scale)
        w_self = jax.random.uniform(k2, (c_in, c_out), jnp.float32,
                                    minval=-scale, maxval=scale)
        b = jnp.zeros((1, c_out), jnp.float32)
        params.append((w, w_self, b))
    return params


if __name__ == "__main__":
    key = jax.random.PRNGKey(0)

    ft_dim = 32
    hiddens = [32, 16]
    class_num = 8

    # Node counts per neighbor-sampling layer (bipartite sizes) N0->N1->N2->N3.
    n_nodes = [320, 192, 64, 16]

    key, kx = jax.random.split(key)
    x = jax.random.normal(kx, (n_nodes[0], ft_dim), jnp.float32)

    # Build H = [(adj, e_id, size), ...]; adj_i : (N_{i+1}, N_i), row-normalized.
    H = []
    for i in range(len(n_nodes) - 1):
        key, ka = jax.random.split(key)
        raw = (jax.random.uniform(ka, (n_nodes[i + 1], n_nodes[i]))
               > 0.7).astype(jnp.float32)
        deg = jnp.maximum(raw.sum(axis=1, keepdims=True), 1.0)
        adj = raw / deg
        size = ((n_nodes[i + 1],), (n_nodes[i],))
        H.append((adj, None, size))

    params = init_params(key, ft_dim, hiddens, class_num)

    # Tile maxes of 128 exercise a real (parallel, reduction) grid at these
    # small demo sizes; production default is 512-row tiles.
    out = hyconv_ind_ft_forward(x, H, params, class_num,
                                tile_m_max=128, tile_k_max=128)
    out = jax.block_until_ready(out)

    assert out.shape == (n_nodes[-1], class_num)
    # log_softmax rows must sum (in prob space) to ~1
    row_sums = jnp.exp(out).sum(axis=-1)
    assert bool(jnp.all(jnp.abs(row_sums - 1.0) < 1e-4))

    # Numerical cross-check against a pure-JAX reference with identical bf16
    # quantization and matmul ordering (residual differences are tile
    # accumulation order only).
    ref = reference_forward(x, H, params, class_num)
    max_err = jnp.max(jnp.abs(out - ref))
    assert bool(max_err < 3e-2), float(max_err)

    print("KERNEL_OK")
</pallas_src>

<mosaic_0001>
module attributes {stable_mosaic.version = 11 : i64} {
  func.func @kernel(%arg0: i32, %arg1: i32, %arg2: memref<128x128xbf16, #tpu.memory_space<vmem>>, %arg3: memref<128x128xbf16, #tpu.memory_space<vmem>>, %arg4: memref<128x128xbf16, #tpu.memory_space<vmem>>, %arg5: memref<256x128xbf16, #tpu.memory_space<vmem>>, %arg6: memref<1x128xf32, #tpu.memory_space<vmem>>, %arg7: memref<128x128xbf16, #tpu.memory_space<vmem>>, %arg8: memref<128x128xf32, #tpu.memory_space<vmem>>) attributes {dimension_semantics = [#tpu.dimension_semantics<parallel>, #tpu.dimension_semantics<arbitrary>], iteration_bounds = array<i64: 2, 3>, scalar_prefetch = 0 : i64, scratch_operands = 1 : i64, tpu.core_type = #tpu.core_type<tc>, window_params = [{transform_indices = @transform_0, window_bounds = array<i64: 128, 128>}, {transform_indices = @transform_1, window_bounds = array<i64: 128, 128>}, {transform_indices = @transform_2, window_bounds = array<i64: 128, 128>}, {pipeline_mode = #tpu.pipeline_mode<synchronous>, transform_indices = @transform_3, window_bounds = array<i64: 256, 128>}, {pipeline_mode = #tpu.pipeline_mode<synchronous>, transform_indices = @transform_4, window_bounds = array<i64: 1, 128>}, {transform_indices = @transform_5, window_bounds = array<i64: 128, 128>}]} {
    %c0_i32 = arith.constant 0 : i32
    %0 = arith.cmpi eq, %arg1, %c0_i32 : i32
    %1 = arith.extui %0 : i1 to i32
    %c0_i32_0 = arith.constant 0 : i32
    %2 = arith.cmpi ne, %1, %c0_i32_0 : i32
    scf.if %2 {
      %cst_9 = arith.constant 0.000000e+00 : f32
      %12 = vector.broadcast %cst_9 : f32 to vector<128x128xf32>
      %c0_10 = arith.constant 0 : index
      %c0_11 = arith.constant 0 : index
      %13 = vector.load %arg8[%c0_10, %c0_11] : memref<128x128xf32, #tpu.memory_space<vmem>>, vector<128x128xf32>
      tpu.vector_store %arg8[%c0_10, %c0_11], %12 {strides = array<i32>} : memref<128x128xf32, #tpu.memory_space<vmem>>, vector<128x128xf32>,
    } else {
    }
    %c0 = arith.constant 0 : index
    %c0_1 = arith.constant 0 : index
    %3 = vector.load %arg8[%c0, %c0_1] : memref<128x128xf32, #tpu.memory_space<vmem>>, vector<128x128xf32>
    %c0_2 = arith.constant 0 : index
    %c0_3 = arith.constant 0 : index
    %4 = vector.load %arg4[%c0_2, %c0_3] : memref<128x128xbf16, #tpu.memory_space<vmem>>, vector<128x128xbf16>
    %c0_4 = arith.constant 0 : index
    %c0_5 = arith.constant 0 : index
    %5 = vector.load %arg2[%c0_4, %c0_5] : memref<128x128xbf16, #tpu.memory_space<vmem>>, vector<128x128xbf16>
    %cst = arith.constant dense<0.000000e+00> : vector<128x128xf32>
    %6 = tpu.matmul %4, %5, %cst {dimension_numbers = #tpu.dot_dimension_numbers<[1], [0], [0], [1], [0, 0, 1, 1], [], []>} : vector<128x128xbf16>, vector<128x128xbf16>, vector<128x128xf32> -> vector<128x128xf32>
    %7 = arith.addf %3, %6 : vector<128x128xf32>
    %c0_6 = arith.constant 0 : index
    %c0_7 = arith.constant 0 : index
    %8 = vector.load %arg8[%c0_6, %c0_7] : memref<128x128xf32, #tpu.memory_space<vmem>>, vector<128x128xf32>
    tpu.vector_store %arg8[%c0_6, %c0_7], %7 {strides = array<i32>} : memref<128x128xf32, #tpu.memory_space<vmem>>, vector<128x128xf32>,
    %c2_i32 = arith.constant 2 : i32
    %9 = arith.cmpi eq, %arg1, %c2_i32 : i32
    %10 = arith.extui %9 : i1 to i32
    %c0_i32_8 = arith.constant 0 : i32
    %11 = arith.cmpi ne, %10, %c0_i32_8 : i32
    scf.if %11 {
      %c0_9 = arith.constant 0 : index
      %c0_10 = arith.constant 0 : index
      %12 = vector.load %arg8[%c0_9, %c0_10] : memref<128x128xf32, #tpu.memory_space<vmem>>, vector<128x128xf32>
      %13 = arith.truncf %12 : vector<128x128xf32> to vector<128x128xbf16>
      %c0_11 = arith.constant 0 : index
      %c0_12 = arith.constant 0 : index
      %14 = vector.load %arg3[%c0_11, %c0_12] : memref<128x128xbf16, #tpu.memory_space<vmem>>, vector<128x128xbf16>
      %15 = tpu.concatenate %13, %14 in 1 : vector<128x128xbf16>, vector<128x128xbf16> -> vector<128x256xbf16>
      %c0_13 = arith.constant 0 : index
      %c0_14 = arith.constant 0 : index
      %16 = vector.load %arg5[%c0_13, %c0_14] : memref<256x128xbf16, #tpu.memory_space<vmem>>, vector<256x128xbf16>
      %cst_15 = arith.constant dense<0.000000e+00> : vector<128x128xf32>
      %17 = tpu.matmul %15, %16, %cst_15 {dimension_numbers = #tpu.dot_dimension_numbers<[1], [0], [0], [1], [0, 0, 1, 1], [], []>} : vector<128x256xbf16>, vector<256x128xbf16>, vector<128x128xf32> -> vector<128x128xf32>
      %c0_16 = arith.constant 0 : index
      %c0_17 = arith.constant 0 : index
      %18 = vector.load %arg6[%c0_16, %c0_17] : memref<1x128xf32, #tpu.memory_space<vmem>>, vector<1x128xf32>
      %19 = vector.broadcast %18 : vector<1x128xf32> to vector<128x128xf32>
      %20 = arith.addf %17, %19 : vector<128x128xf32>
      %cst_18 = arith.constant 0.000000e+00 : f32
      %21 = vector.broadcast %cst_18 : f32 to vector<128x128xf32>
      %22 = arith.maximumf %20, %21 : vector<128x128xf32>
      %23 = arith.truncf %22 : vector<128x128xf32> to vector<128x128xbf16>
      %c0_19 = arith.constant 0 : index
      %c0_20 = arith.constant 0 : index
      %24 = vector.load %arg7[%c0_19, %c0_20] : memref<128x128xbf16, #tpu.memory_space<vmem>>, vector<128x128xbf16>
      tpu.vector_store %arg7[%c0_19, %c0_20], %23 {strides = array<i32>} : memref<128x128xbf16, #tpu.memory_space<vmem>>, vector<128x128xbf16>,
    } else {
    }
    return
  }
  func.func @transform_0(%arg0: i32, %arg1: i32) -> (i32, i32) {
    %c0_i32 = arith.constant 0 : i32
    %c0_i32_0 = arith.constant 0 : i32
    return %arg1, %c0_i32 : i32, i32
  }
  func.func @transform_1(%arg0: i32, %arg1: i32) -> (i32, i32) {
    %c0_i32 = arith.constant 0 : i32
    %c0_i32_0 = arith.constant 0 : i32
    return %arg0, %c0_i32 : i32, i32
  }
  func.func @transform_2(%arg0: i32, %arg1: i32) -> (i32, i32) {
    %c0_i32 = arith.constant 0 : i32
    return %arg0, %arg1 : i32, i32
  }
  func.func @transform_3(%arg0: i32, %arg1: i32) -> (i32, i32) {
    %c0_i32 = arith.constant 0 : i32
    %c0_i32_0 = arith.constant 0 : i32
    %c0_i32_1 = arith.constant 0 : i32
    return %c0_i32, %c0_i32_0 : i32, i32
  }
  func.func @transform_4(%arg0: i32, %arg1: i32) -> (i32, i32) {
    %c0_i32 = arith.constant 0 : i32
    %c0_i32_0 = arith.constant 0 : i32
    %c0_i32_1 = arith.constant 0 : i32
    return %c0_i32, %c0_i32_0 : i32, i32
  }
  func.func @transform_5(%arg0: i32, %arg1: i32) -> (i32, i32) {
    %c0_i32 = arith.constant 0 : i32
    %c0_i32_0 = arith.constant 0 : i32
    return %arg0, %c0_i32 : i32, i32
  }
}

</mosaic_0001>

<bundles_post_ra>
// kernel: tpu_custom_call.1
= control target key start
LH: loop header
LB: loop body
LE: loop exit
PB: predicated region body
PF: predicated region fallthrough
CT: control target
= control target key end

     0   :  { %s2359_s0 = inlined_call_operand.hbm [shape: bf16[384,128], index: 0, kind: input, shape index: {}]   ;;  %s2360_s1 = inlined_call_operand.hbm [shape: bf16[384,128], index: 1, kind: input, shape index: {}]   ;;  %s2361_s2 = inlined_call_operand.hbm [shape: bf16[256,384], index: 2, kind: input, shape index: {}]   ;;  %s2362_s3 = inlined_call_operand.hbm [shape: bf16[256,128], index: 3, kind: input, shape index: {}]   ;;  %s2363_s4 = inlined_call_operand.vmem [shape: f32[1,128], index: 4, kind: input, shape index: {}]   ;;  %s2364_s5 = inlined_call_operand.hbm [shape: bf16[256,128], index: 5, kind: output, shape index: {}]  }
   0x1   :  { %2378 = sst [smem:[#allocation27_spill]] %s2360_s1 }
   0x2   :  { %2379 = sst [smem:[#allocation28_spill]] %s2362_s3 }
   0x3   :  { %2380 = sst [smem:[#allocation29_spill]] %s2363_s4 }
   0x4   :  { %2381 = sst [smem:[#allocation30_spill]] %s2364_s5 }
   0x5   :  { %10 = vsyncpa [#allocation4], 0 }
   0x6   :  { %12 = vsyncpa [#allocation4 + $0x1], 0 }
   0x7   :  { %13 = vsyncpa [#allocation7], 0 }
   0x8   :  { %15 = vsyncpa [#allocation7 + $0x1], 0 }
   0x9   :  { %16 = vsyncpa [#allocation10], 0 }
   0xa   :  { %17 = vsyncpa [#allocation5], 0 }
   0xb   :  { %19 = vsyncpa [#allocation5 + $0x1], 0  ;;  %s1979_s18 = smov 0   ;;  %s1981_s19 = smov 0  }
   0xc   :  { %s1983_s20 = smov 0   ;;  %s1985_s21 = smov 0  }
   0xd   :  { %s1987_s22 = smov 0   ;;  %s1989_s23 = smov 0  }
   0xe   :  { %s1991_s24 = smov 0   ;;  %s1993_s25 = smov 0  }
   0xf   :  { %s1995_s26 = smov 0   ;;  %s1997_s27 = smov 0  }
  0x10   :  { %s1999_s28 = smov 0   ;;  %s2001_s29 = smov 0  }
  0x11   :  { %s2003_s30 = smov 0   ;;  %s2005_s6 = smov 0  }
  0x12 LB: > { %2382 = sst [smem:[#allocation17_spill]] %s1900_s21  ;;  %s2050_s7 = sadd.s32 4294967295, %s1940_s6   ;;  %s1940_s6 = sphi %s2005_s6, %s25_s6   ;;  %s1936_s30 = sphi %s2003_s30, %s2432_s30   ;;  %s1932_s29 = sphi %s2001_s29, %s2431_s29   ;;  %s1928_s28 = sphi %s1999_s28, %s2430_s28   ;;  %s1924_s27 = sphi %s1997_s27, %s2429_s27   ;;  %s1920_s26 = sphi %s1995_s26, %s2418_s26   ;;  %s1916_s25 = sphi %s1993_s25, %s2428_s25   ;;  %s1912_s24 = sphi %s1991_s24, %s2427_s24   ;;  %s1908_s23 = sphi %s1989_s23, %s2416_s23   ;;  %s1904_s22 = sphi %s1987_s22, %s2426_s22   ;;  %s1900_s21 = sphi %s1985_s21, %s2425_s21   ;;  %s1896_s20 = sphi %s1983_s20, %s2424_s20   ;;  %s1892_s19 = sphi %s1981_s19, %s2423_s19   ;;  %s1888_s18 = sphi %s1979_s18, %s2422_s18  }
  0x13   : > { %2383 = sst [smem:[#allocation18_spill]] %s1908_s23  ;;  %s1190_s8 = sadd.s32 4294967294, %s1940_s6  }
  0x14   : > { %2384 = sst [smem:[#allocation19_spill]] %s1920_s26  ;;  %p52_p0 = scmp.eq.s32.totalorder %s1940_s6, 0 }
  0x15   : > { %2385 = sst [smem:[#allocation20_spill]] %s1928_s28  ;;  %p77_p1 = scmp.ne.s32.totalorder %s1908_s23, %s1904_s22 }
  0x16   : > { %p83_p2 = scmp.ne.s32.totalorder %s1904_s22, %s1900_s21  ;;  %p177_p3 = scmp.eq.s32.totalorder %s2050_s7, 5 }
  0x17   : > { %p2063_p4 = por %p77_p1, %p52_p0  ;;  %p183_p5 = scmp.eq.s32.totalorder %s1190_s8, 5 }
  0x18   : > { %p2067_p6 = por %p177_p3, %p77_p1  ;;  %p1539_p8 = scmp.lt.s32.totalorder %s1940_s6, 6 }
  0x19   : > { %p2074_p7 = por %p183_p5, %p83_p2  ;;  %s242_s14 = sand.u32 1, %s1940_s6  }
  0x1a   : > { %s2387_s12 = scalar_select %p2067_p6, 1, 0 }
  0x1b   : > { %s2389_s13 = scalar_select %p2074_p7, 1, 0 }
  0x1c   : > { %2388 = sst [smem:[#allocation21_spill]] %s2387_s12  ;;  %s244_s15 = sand.u32 1, %s1908_s23  }
  0x1d   : > { %2390 = sst [smem:[#allocation22_spill]] %s2389_s13  ;;  %s1197_s16 = sshll.u32 %s244_s15, 6 }
  0x1e   : > { %s1378_s17 = sshll.u32 %s1936_s30, 6  ;;  %s2391_s1 = sld [smem:[#allocation27_spill]] }
  0x1f   : > { %s246_s12 = scalar_lea.vmem [#allocation6], %s1197_s16  ;;  %p1528_p9 = pnand %p1539_p8, %p2063_p4 }
  0x20   : > { %s254_s28 = sshll.u32 %s246_s12, 4  ;;  %s2089_s13 = scalar_lea.sflag [#allocation7], %s242_s14  ;;  %s255_s28 = int_to_ptr.vmem [resolvable:$true] %s254_s28 }
  0x21   : > { %s2369_s15 = smov 64   ;;  %s2371_s4 = smov 4  }
  0x22   : > { %p58_p10 = scmp.eq.s32.totalorder %s2050_s7, 0  ;;  %p1191_p11 = scmp.ge.s32.totalorder %s1940_s6, 1 }
  0x23   : > { %p190_p12 = scmp.lt.s32.totalorder %s1940_s6, 7  ;;  %s2392_s3 = sld [smem:[#allocation28_spill]] }
  0x24   : > { %s251_s8 = scalar_lea.hbm %s2391_s1, %s1378_s17  ;;  %p2106_p13 = por %p83_p2, %p58_p10 }
  0x25   : > { %s252_s5 = sshll.u32 %s251_s8, 4  ;;  %p2110_p1 = pnand %p1191_p11, %p190_p12  ;;  %s253_s5 = int_to_ptr.hbm [resolvable:$true] %s252_s5 }
  0x26   : > { %1530 = dma.hbm_to_vmem [thread:$0]  (!%p1528_p9), %s253_s5, 1024, %s255_s28, %s2089_s13, %s2369_s15, %s2369_s15, %s2371_s4  }
  0x27   : > { %s1944_s28 = smov [#allocation9]   ;;  %p1520_p3 = pneg %p2110_p1 }
  0x28   : > { %s203_s14 = sshll.u32 %s1944_s28, 4  ;;  %s34_s16 = sadd.s32 1, %s1932_s29  ;;  %s204_s14 = int_to_ptr.vmem [resolvable:$true] %s203_s14 }
  0x29   : > { %s201_s11 = sshll.u32 %s2392_s3, 4  ;;  %p1521_p2 = pnand %p1520_p3, %p58_p10  ;;  %s202_s11 = int_to_ptr.hbm [resolvable:$true] %s201_s11 }
  0x2a   : > { %p35_p4 = scmp.ge.s32.totalorder %s34_s16, 3  ;;  %s44_s17 = sadd.s32 1, %s1920_s26 }
  0x2b   : > { %1523 = dma.hbm_to_vmem [thread:$0]  (!%p1521_p2), %s202_s11, 2048, %s204_s14, [#allocation10], %s2369_s15, %s2369_s15, %s2371_s4  }
  0x2c   : > { %p51_p5 = scmp.ne.s32.totalorder %s1920_s26, %s1916_s25  ;;  %p57_p9 = scmp.ne.s32.totalorder %s1916_s25, %s1912_s24 }
  0x2d   : > { %s2434_s16 = smov (%p35_p4, %s34_s16), 0  ;;  %s2396_s8 = sadd.s32 1, %s1936_s30 }
  0x2e   : > { %2395 = sst [smem:[#allocation23_spill]] %s2434_s16  ;;  %s2436_s8 = smov (!%p35_p4, %s2396_s8), %s1936_s30 }
  0x2f   : > { %s41_s9 = ssub.s32 %s1932_s29, %s2434_s16  ;;  %p2136_p11 = por %p52_p0, %p51_p5 }
  0x30   : > { %p39_p12 = scmp.ge.s32.totalorder %s2436_s8, 2  ;;  %p42_p3 = scmp.eq.s32.totalorder %s41_s9, 0 }
  0x31   : > { %p2142_p2 = por %p58_p10, %p57_p9  ;;  %s220_s24 = sand.u32 1, %s1920_s26  }
  0x32   : > { %s2438_s8 = smov (%p39_p12, %s2436_s8), 0  ;;  %s1194_s1 = sshll.u32 %s220_s24, 6 }
  0x33   : > { %2399 = sst [smem:[#allocation24_spill]] %s2438_s8  ;;  %s67_s14 = ssub.s32 %s1936_s30, %s2438_s8 }
  0x34   : > { %s2150_s28 = scalar_select %p42_p3, %s1920_s26, %s44_s17  }
  0x35   : > { %p68_p4 = scmp.eq.s32.totalorder %s67_s14, 0  ;;  %s95_s15 = sor.u32 %s67_s14, %s41_s9 }
  0x36   : > { %2400 = sst [smem:[#allocation25_spill]] %s2150_s28  ;;  %p2154_p5 = scmp.eq.s32.totalorder %s95_s15, 0 }
  0x37   : > { %s2402_s3 = sadd.s32 1, %s1908_s23  ;;  %s1377_s17 = sshll.u32 %s1932_s29, 6 }
  0x38   : > { %s2161_s16 = scalar_select %p68_p4, %s1908_s23, %s2402_s3  }
  0x39   : > { %s229_s9 = scalar_lea.hbm %s2359_s0, %s1377_s17  ;;  %s224_s15 = scalar_lea.vmem [#allocation3], %s1194_s1 }
  0x3a   : > { %2403 = sst [smem:[#allocation26_spill]] %s2161_s16  ;;  %s232_s14 = sshll.u32 %s224_s15, 4  ;;  %s233_s14 = int_to_ptr.vmem [resolvable:$true] %s232_s14 }
  0x3b   : > { %s230_s26 = sshll.u32 %s229_s9, 4  ;;  %p1525_p9 = pnand %p1539_p8, %p2136_p11  ;;  %s231_s26 = int_to_ptr.hbm [resolvable:$true] %s230_s26 }
  0x3c   : > { %s221_s21 = scalar_lea.sflag [#allocation4], %s220_s24  ;;  %s2404_s3 = smov 4  }
  0x3d   : > { %s2405_s16 = smov 64   ;;  %s98_s23 = sadd.s32 1, %s1896_s20 }
  0x3e   : > { %1527 = dma.hbm_to_vmem [thread:$0]  (!%p1525_p9), %s231_s26, 1024, %s233_s14, %s221_s21, %s2405_s16, %s2405_s16, %s2404_s3  }
  0x3f   : > { %s2178_s8 = scalar_select %p2154_p5, %s1896_s20, %s98_s23  }
  0x40   : > { %p105_p12 = scmp.ne.s32.totalorder %s1896_s20, %s1892_s19  ;;  %p111_p3 = scmp.ne.s32.totalorder %s1892_s19, %s1888_s18 }
  0x41   : > { %s266_s1 = sand.u32 1, %s1896_s20   ;;  %s1507_s28 = smul.u32 48, %s1936_s30 }
  0x42   : > { %p107_p4 = por %p105_p12, %p52_p0  ;;  %p2190_p7 = por %p111_p3, %p58_p10 }
  0x43   : > { %s1200_s24 = sshll.u32 %s266_s1, 6  ;;  %s273_s17 = sadd.s32 %s1932_s29, %s1507_s28 }
  0x44   : > { %s1203_s21 = sshll.u32 %s273_s17, 2  ;;  %s268_s9 = scalar_lea.vmem [#allocation8], %s1200_s24 }
  0x45   : > { %s275_s23 = scalar_lea.hbm %s2361_s2, %s1203_s21  ;;  %s278_s15 = sshll.u32 %s268_s9, 4  ;;  %s279_s15 = int_to_ptr.vmem [resolvable:$true] %s278_s15 }
  0x46   : > { %s276_s18 = sshll.u32 %s275_s23, 4  ;;  %p1531_p11 = pnand %p1539_p8, %p107_p4  ;;  %s277_s18 = int_to_ptr.hbm [resolvable:$true] %s276_s18 }
  0x47   : > { %s1945_s14 = smov 192   ;;  %290 = sbr.rel (%p2110_p1) target bundleno = 555 (0x22b), region = 40 }
  0x48   : > { %1533 = dma.hbm_to_vmem [thread:$0]  (!%p1531_p11), %s277_s18, 1024, %s279_s15, %s2089_s13, %s1945_s14, %s2405_s16, %s2404_s3  }
  0x49   : > { %s292_s1 = sand.u32 (!%p2110_p1), 1, %s1916_s25  }
  0x4a   : > { %s1205_s28 = sshll.u32 (!%p2110_p1), %s292_s1, 6  ;;  %s293_s17 = scalar_lea.sflag (!%p2110_p1), [#allocation4], %s292_s1 }
  0x4b   : > { %s2206_s21 = scalar_lea.vmem (!%p2110_p1), [#allocation3], %s1205_s28 }
  0x4c   : > { %1867 = dma.done.wait (%p2142_p2), %s293_s17, 1024  }
  0x4d   : > { %1869 = vsyncadd (%p2142_p2), %s293_s17, 4294966272  ;;  %s302_s13 = sand.u32 1, %s2050_s7   ;;  %s304_s16 = sand.u32 1, %s1904_s22  }
  0x4e   : > { %s1206_s5 = sshll.u32 %s304_s16, 6  ;;  %s303_s3 = scalar_lea.sflag [#allocation7], %s302_s13 }
  0x4f   : > { %s2216_s24 = scalar_lea.vmem [#allocation6], %s1206_s5 }
  0x50   : > { %1871 = dma.done.wait (%p2106_p13), %s303_s3, 1024  }
  0x51   : > { %1873 = vsyncadd (%p2106_p13), %s303_s3, 4294966272  ;;  %s314_s11 = sand.u32 1, %s1892_s19  }
  0x52   : > { %s1207_s26 = sshll.u32 %s314_s11, 6 }
  0x53   : > { %s2223_s4 = scalar_lea.vmem [#allocation8], %s1207_s26 }
  0x54   : > { %1875 = dma.done.wait (%p2190_p7), %s303_s3, 1024  }
  0x55   : > { %1877 = vsyncadd (%p2190_p7), %s303_s3, 4294966272 }
  0x56   : > { %1879 = dma.done.wait (%p58_p10), [#allocation10], 2048  }
  0x57   : > { %1881 = vsyncadd (%p58_p10), [#allocation10], 4294965248  ;;  %s2233_s23 = scalar_lea.vmem [#allocation11], %s1206_s5  ;;  %p1210_p0 = scmp.ne.s32.totalorder %s1924_s27, 0 }
  0x59   : > { %366 = sbr.rel (%p1210_p0) target bundleno = 111 (0x6f), region = 60 }
  0x5e   : > { %v1946_v0 = vmov 0.0  }
  0x5f   : > { %367 = vst [vmem:[#allocation2 + $0x30] sm:$0xff] %v1946_v0 }
  0x60   : > { %368 = vst [vmem:[#allocation2] sm:$0xff] %v1946_v0 }
  0x61   : > { %369 = vst [vmem:[#allocation2 + $0x58] sm:$0xff] %v1946_v0 }
  0x62   : > { %370 = vst [vmem:[#allocation2 + $0x18] sm:$0xff] %v1946_v0 }
  0x63   : > { %371 = vst [vmem:[#allocation2 + $0x50] sm:$0xff] %v1946_v0 }
  0x64   : > { %372 = vst [vmem:[#allocation2 + $0x68] sm:$0xff] %v1946_v0 }
  0x65   : > { %373 = vst [vmem:[#allocation2 + $0x8] sm:$0xff] %v1946_v0 }
  0x66   : > { %374 = vst [vmem:[#allocation2 + $0x48] sm:$0xff] %v1946_v0 }
  0x67   : > { %375 = vst [vmem:[#allocation2 + $0x40] sm:$0xff] %v1946_v0 }
  0x68   : > { %376 = vst [vmem:[#allocation2 + $0x20] sm:$0xff] %v1946_v0 }
  0x69   : > { %377 = vst [vmem:[#allocation2 + $0x10] sm:$0xff] %v1946_v0 }
  0x6a   : > { %378 = vst [vmem:[#allocation2 + $0x38] sm:$0xff] %v1946_v0 }
  0x6b   : > { %379 = vst [vmem:[#allocation2 + $0x60] sm:$0xff] %v1946_v0 }
  0x6c   : > { %380 = vst [vmem:[#allocation2 + $0x70] sm:$0xff] %v1946_v0 }
  0x6d   : > { %381 = vst [vmem:[#allocation2 + $0x78] sm:$0xff] %v1946_v0 }
  0x6e   : > { %382 = vst [vmem:[#allocation2 + $0x28] sm:$0xff] %v1946_v0 }
  0x6f PF: > { %v1394_v1 = vld [vmem:[%s2206_s21 + $0x38] sm:$0xff]  ;;  %v1393_v2 = vld [vmem:[%s2206_s21 + $0x30] sm:$0xff]  ;;  %v1392_v3 = vld [vmem:[%s2206_s21 + $0x28] sm:$0xff]  ;;  %p1275_p7 = scmp.ne.s32.totalorder %s1924_s27, 2 }
  0x70   : > { %527 = vmatpush.bf16.msra.mxu0 %v1394_v1  ;;  %1467 = vmatpush.bf16.msra.mxu1 %v1394_v1  ;;  %v1391_v4 = vld [vmem:[%s2206_s21 + $0x20] sm:$0xff]  ;;  %v1390_v5 = vld [vmem:[%s2206_s21 + $0x18] sm:$0xff]  ;;  %v1389_v6 = vld [vmem:[%s2206_s21 + $0x10] sm:$0xff]  ;;  %s2407_s12 = sld [smem:[#allocation29_spill]] (!%p1275_p7) }
  0x71   : > { %1468 = vmatpush.bf16.msra.mxu2 %v1394_v1  ;;  %1469 = vmatpush.bf16.msra.mxu3 %v1394_v1  ;;  %v1388_v7 = vld [vmem:[%s2206_s21 + $0x8] sm:$0xff]  ;;  %v1387_v8 = vld [vmem:[%s2206_s21] sm:$0xff]  ;;  %v1381_v10 = vld [vmem:[%s2223_s4 + $0x10] sm:$0xff] }
  0x72   : > { %v1379_v9 = vld [vmem:[%s2223_s4] sm:$0xff]  ;;  %v1385_v12 = vld [vmem:[%s2223_s4 + $0x30] sm:$0xff]  ;;  %v1380_v13 = vld [vmem:[%s2223_s4 + $0x8] sm:$0xff] }
  0x73   : > { %v1383_v11 = vld [vmem:[%s2223_s4 + $0x20] sm:$0xff]  ;;  %v1382_v14 = vld [vmem:[%s2223_s4 + $0x18] sm:$0xff]  ;;  %v1384_v15 = vld [vmem:[%s2223_s4 + $0x28] sm:$0xff] }
  0x74   : > { %528 = vmatpush.bf16.msra.mxu0 %v1393_v2  ;;  %1470 = vmatpush.bf16.msra.mxu1 %v1393_v2  ;;  %v1386_v16 = vld [vmem:[%s2223_s4 + $0x38] sm:$0xff]  ;;  %v383_v17 = vld [vmem:[#allocation2 + $0x30] sm:$0xff]  ;;  %v391_v23 = vld [vmem:[#allocation2 + $0x40] sm:$0xff] }
  0x75   : > { %1471 = vmatpush.bf16.msra.mxu2 %v1393_v2  ;;  %1472 = vmatpush.bf16.msra.mxu3 %v1393_v2  ;;  %v387_v18 = vld [vmem:[#allocation2 + $0x50] sm:$0xff]  ;;  %v395_v24 = vld [vmem:[#allocation2 + $0x60] sm:$0xff]  ;;  %v388_v26 = vld [vmem:[#allocation2 + $0x68] sm:$0xff] }
  0x76   : > { %v384_v25 = vld [vmem:[#allocation2] sm:$0xff]  ;;  %v396_v36 = vld [vmem:[#allocation2 + $0x70] sm:$0xff]  ;;  %v385_v37 = vld [vmem:[#allocation2 + $0x58] sm:$0xff] }
  0x77   : > { %v392_v35 = vld [vmem:[#allocation2 + $0x20] sm:$0xff]  ;;  %v389_v38 = vld [vmem:[#allocation2 + $0x8] sm:$0xff]  ;;  %v393_v47 = vld [vmem:[#allocation2 + $0x10] sm:$0xff] }
  0x78   : > { %529 = vmatpush.bf16.msra.mxu0 %v1392_v3  ;;  %1473 = vmatpush.bf16.msra.mxu1 %v1392_v3  ;;  %v397_v48 = vld [vmem:[#allocation2 + $0x78] sm:$0xff]  ;;  %v390_v50 = vld [vmem:[#allocation2 + $0x48] sm:$0xff] }
  0x79   : > { %1474 = vmatpush.bf16.msra.mxu2 %v1392_v3  ;;  %1475 = vmatpush.bf16.msra.mxu3 %v1392_v3  ;;  %v386_v49 = vld [vmem:[#allocation2 + $0x18] sm:$0xff]  ;;  %v398_v60 = vld [vmem:[#allocation2 + $0x28] sm:$0xff] }
  0x7a   : > { %v394_v59 = vld [vmem:[#allocation2 + $0x38] sm:$0xff] }
  0x7c   : > { %530 = vmatpush.bf16.msra.mxu0 %v1391_v4  ;;  %1476 = vmatpush.bf16.msra.mxu1 %v1391_v4 }
  0x7d   : > { %1477 = vmatpush.bf16.msra.mxu2 %v1391_v4  ;;  %1478 = vmatpush.bf16.msra.mxu3 %v1391_v4 }
  0x80   : > { %531 = vmatpush.bf16.msra.mxu0 %v1390_v5  ;;  %1479 = vmatpush.bf16.msra.mxu1 %v1390_v5 }
  0x81   : > { %1480 = vmatpush.bf16.msra.mxu2 %v1390_v5  ;;  %1481 = vmatpush.bf16.msra.mxu3 %v1390_v5 }
  0x84   : > { %532 = vmatpush.bf16.msra.mxu0 %v1389_v6  ;;  %1482 = vmatpush.bf16.msra.mxu1 %v1389_v6 }
  0x85   : > { %1483 = vmatpush.bf16.msra.mxu2 %v1389_v6  ;;  %1484 = vmatpush.bf16.msra.mxu3 %v1389_v6 }
  0x88   : > { %533 = vmatpush.bf16.msra.mxu0 %v1388_v7  ;;  %1485 = vmatpush.bf16.msra.mxu1 %v1388_v7 }
  0x89   : > { %1486 = vmatpush.bf16.msra.mxu2 %v1388_v7  ;;  %1487 = vmatpush.bf16.msra.mxu3 %v1388_v7 }
  0x8c   : > { %534 = vmatpush.bf16.msra.mxu0 %v1387_v8  ;;  %1488 = vmatpush.bf16.msra.mxu1 %v1387_v8 }
  0x8d   : > { %1489 = vmatpush.bf16.msra.mxu2 %v1387_v8  ;;  %1490 = vmatpush.bf16.msra.mxu3 %v1387_v8 }
  0x8f   : > { %535 = vmatmul.bf16.vlgmr.msra.gmra.mxu0 %v1379_v9  ;;  %545 = vmatmul.bf16.vlgmr.msra.gmra.mxu1 %v1381_v10 }
  0x90   : > { %555 = vmatmul.bf16.vlgmr.msra.gmra.mxu2 %v1383_v11  ;;  %565 = vmatmul.bf16.vlgmr.msra.gmra.mxu3 %v1385_v12 }
  0x9f   : > { %540 = vmatmul.bf16.gmra.mxu0 %v1380_v13  ;;  %550 = vmatmul.bf16.gmra.mxu1 %v1382_v14 }
  0xa0   : > { %560 = vmatmul.bf16.gmra.mxu2 %v1384_v15  ;;  %570 = vmatmul.bf16.gmra.mxu3 %v1386_v16 }
 0x10c   : > { %v536_v19 = vpop.f32.mrf.mxu0  ;;  %v546_v20 = vpop.f32.mrf.mxu1 }
 0x10d   : > { %v576_v21 = vadd.f32 %v536_v19, %v383_v17  ;;  %v580_v22 = vadd.f32 %v546_v20, %v387_v18 }
 0x10f   : > { %592 = vst [vmem:[#allocation2 + $0x30] sm:$0xff] %v576_v21 }
 0x110   : > { %596 = vst [vmem:[#allocation2 + $0x50] sm:$0xff] %v580_v22 }
 0x113   : > { %v556_v27 = vpop.f32.mrf.mxu2  ;;  %v566_v28 = vpop.f32.mrf.mxu3 }
 0x114   : > { %v584_v29 = vadd.f32 %v556_v27, %v391_v23  ;;  %v588_v30 = vadd.f32 %v566_v28, %v395_v24  ;;  %v538_v31 = vpop.f32.mrf.mxu0  ;;  %v548_v32 = vpop.f32.mrf.mxu1 }
 0x115   : > { %v577_v33 = vadd.f32 %v538_v31, %v384_v25  ;;  %v581_v34 = vadd.f32 %v548_v32, %v388_v26 }
 0x116   : > { %600 = vst [vmem:[#allocation2 + $0x40] sm:$0xff] %v584_v29 }
 0x117   : > { %604 = vst [vmem:[#allocation2 + $0x60] sm:$0xff] %v588_v30 }
 0x118   : > { %593 = vst [vmem:[#allocation2] sm:$0xff] %v577_v33 }
 0x119   : > { %597 = vst [vmem:[#allocation2 + $0x68] sm:$0xff] %v581_v34 }
 0x11b   : > { %v558_v39 = vpop.f32.mrf.mxu2  ;;  %v568_v40 = vpop.f32.mrf.mxu3 }
 0x11c   : > { %v585_v41 = vadd.f32 %v558_v39, %v392_v35  ;;  %v589_v42 = vadd.f32 %v568_v40, %v396_v36  ;;  %v541_v43 = vpop.f32.mrf.mxu0  ;;  %v551_v44 = vpop.f32.mrf.mxu1 }
 0x11d   : > { %v578_v45 = vadd.f32 %v541_v43, %v385_v37  ;;  %v582_v46 = vadd.f32 %v551_v44, %v389_v38 }
 0x11e   : > { %601 = vst [vmem:[#allocation2 + $0x20] sm:$0xff] %v585_v41 }
 0x11f   : > { %605 = vst [vmem:[#allocation2 + $0x70] sm:$0xff] %v589_v42 }
 0x120   : > { %594 = vst [vmem:[#allocation2 + $0x58] sm:$0xff] %v578_v45 }
 0x121   : > { %598 = vst [vmem:[#allocation2 + $0x8] sm:$0xff] %v582_v46 }
 0x123   : > { %v561_v51 = vpop.f32.mrf.mxu2  ;;  %v571_v52 = vpop.f32.mrf.mxu3 }
 0x124   : > { %v586_v53 = vadd.f32 %v561_v51, %v393_v47  ;;  %v590_v54 = vadd.f32 %v571_v52, %v397_v48  ;;  %v543_v55 = vpop.f32.mrf.mxu0  ;;  %v553_v56 = vpop.f32.mrf.mxu1 }
 0x125   : > { %v579_v57 = vadd.f32 %v543_v55, %v386_v49  ;;  %v583_v58 = vadd.f32 %v553_v56, %v390_v50 }
 0x126   : > { %602 = vst [vmem:[#allocation2 + $0x10] sm:$0xff] %v586_v53 }
 0x127   : > { %606 = vst [vmem:[#allocation2 + $0x78] sm:$0xff] %v590_v54 }
 0x128   : > { %595 = vst [vmem:[#allocation2 + $0x18] sm:$0xff] %v579_v57 }
 0x129   : > { %599 = vst [vmem:[#allocation2 + $0x48] sm:$0xff] %v583_v58 }
 0x12b   : > { %v563_v61 = vpop.f32.mrf.mxu2  ;;  %v573_v62 = vpop.f32.mrf.mxu3  ;;  %611 = sbr.rel (%p1275_p7) target bundleno = 533 (0x215), region = 64 }
 0x12c   : > { %v587_v63 = vadd.f32 %v563_v61, %v394_v59  ;;  %v591_v0 = vadd.f32 %v573_v62, %v398_v60 }
 0x12e   : > { %603 = vst [vmem:[#allocation2 + $0x38] sm:$0xff] %v587_v63 }
 0x12f   : > { %607 = vst [vmem:[#allocation2 + $0x28] sm:$0xff] %v591_v0 }
 0x130   : > { %v1410_v1 = vld [vmem:[#allocation9 + $0x38] sm:$0xff]  ;;  %v1409_v3 = vld [vmem:[#allocation9 + $0x30] sm:$0xff]  ;;  %v1408_v5 = vld [vmem:[#allocation9 + $0x28] sm:$0xff] }
 0x131   : > { %v1418_v2 = vld [vmem:[#allocation9 + $0x78] sm:$0xff]  ;;  %888 = vmatpush.bf16.msra.mxu0 %v1410_v1  ;;  %1491 = vmatpush.bf16.msra.mxu2 %v1410_v1  ;;  %v1417_v4 = vld [vmem:[#allocation9 + $0x70] sm:$0xff]  ;;  %v1416_v6 = vld [vmem:[#allocation9 + $0x68] sm:$0xff] }
 0x132   : > { %937 = vmatpush.bf16.msra.mxu1 %v1418_v2  ;;  %1499 = vmatpush.bf16.msra.mxu3 %v1418_v2  ;;  %v1407_v7 = vld [vmem:[#allocation9 + $0x20] sm:$0xff]  ;;  %v1406_v9 = vld [vmem:[#allocation9 + $0x18] sm:$0xff]  ;;  %v1405_v11 = vld [vmem:[#allocation9 + $0x10] sm:$0xff] }
 0x133   : > { %v1415_v8 = vld [vmem:[#allocation9 + $0x60] sm:$0xff]  ;;  %v1414_v10 = vld [vmem:[#allocation9 + $0x58] sm:$0xff]  ;;  %v612_v12 = vld [vmem:[#allocation2 + $0x30] sm:$0xff] }
 0x134   : > { %v613_v13 = vld [vmem:[#allocation2] sm:$0xff]  ;;  %v1413_v16 = vld [vmem:[#allocation9 + $0x50] sm:$0xff]  ;;  %v628_v17 = vpack.c.bf16 %v612_v12, %v612_v12  ;;  %v1404_v21 = vld [vmem:[#allocation9 + $0x8] sm:$0xff] }
 0x135   : > { %889 = vmatpush.bf16.msra.mxu0 %v1409_v3  ;;  %1492 = vmatpush.bf16.msra.mxu2 %v1409_v3  ;;  %v620_v14 = vld [vmem:[#allocation2 + $0x40] sm:$0xff]  ;;  %v629_v18 = vpack.c.bf16 %v613_v13, %v613_v13  ;;  %v1412_v22 = vld [vmem:[#allocation9 + $0x48] sm:$0xff]  ;;  %v614_v33 = vld [vmem:[#allocation2 + $0x58] sm:$0xff] }
 0x136   : > { %938 = vmatpush.bf16.msra.mxu1 %v1417_v4  ;;  %1500 = vmatpush.bf16.msra.mxu3 %v1417_v4  ;;  %v621_v15 = vld [vmem:[#allocation2 + $0x20] sm:$0xff]  ;;  %v636_v19 = vpack.c.bf16 %v620_v14, %v620_v14  ;;  %v676_v23 = vunpack.c.l.b16 %v628_v17  ;;  %v615_v34 = vld [vmem:[#allocation2 + $0x18] sm:$0xff]  ;;  %v622_v35 = vld [vmem:[#allocation2 + $0x10] sm:$0xff]  ;;  %v630_v37 = vpack.c.bf16 %v614_v33, %v614_v33 }
 0x137   : > { %v637_v20 = vpack.c.bf16 %v621_v15, %v621_v15  ;;  %v677_v24 = vunpack.c.l.b16 %v629_v18  ;;  %v1403_v27 = vld [vmem:[#allocation9] sm:$0xff]  ;;  %v623_v36 = vld [vmem:[#allocation2 + $0x38] sm:$0xff]  ;;  %v631_v38 = vpack.c.bf16 %v615_v34, %v615_v34  ;;  %v638_v39 = vpack.c.bf16 %v622_v35, %v622_v35  ;;  %v1396_v47 = vld [vmem:[%s2216_s24 + $0x8] sm:$0xff] }
 0x138   : > { %v684_v25 = vunpack.c.l.b16 %v636_v19  ;;  %v1411_v28 = vld [vmem:[#allocation9 + $0x40] sm:$0xff]  ;;  %v639_v40 = vpack.c.bf16 %v623_v36, %v623_v36  ;;  %v678_v41 = vunpack.c.l.b16 %v630_v37  ;;  %v1400_v48 = vld [vmem:[%s2216_s24 + $0x28] sm:$0xff]  ;;  %v616_v49 = vld [vmem:[#allocation2 + $0x50] sm:$0xff] }
 0x139   : > { %890 = vmatpush.bf16.msra.mxu0 %v1408_v5  ;;  %1493 = vmatpush.bf16.msra.mxu2 %v1408_v5  ;;  %v685_v26 = vunpack.c.l.b16 %v637_v20  ;;  %v692_v29 = vpack.c.b16 %v677_v24, %v676_v23  ;;  %v1395_v31 = vld [vmem:[%s2216_s24] sm:$0xff]  ;;  %v679_v42 = vunpack.c.l.b16 %v631_v38  ;;  %v686_v43 = vunpack.c.l.b16 %v638_v39  ;;  %v617_v50 = vld [vmem:[#allocation2 + $0x68] sm:$0xff]  ;;  %v625_v52 = vld [vmem:[#allocation2 + $0x70] sm:$0xff] }
 0x13a   : > { %939 = vmatpush.bf16.msra.mxu1 %v1416_v6  ;;  %1501 = vmatpush.bf16.msra.mxu3 %v1416_v6  ;;  %v1399_v32 = vld [vmem:[%s2216_s24 + $0x20] sm:$0xff]  ;;  %v687_v44 = vunpack.c.l.b16 %v639_v40  ;;  %v632_v53 = vpack.c.bf16 %v616_v49, %v616_v49  ;;  %v633_v54 = vpack.c.bf16 %v617_v50, %v617_v50  ;;  %v641_v56 = vpack.c.bf16 %v625_v52, %v625_v52  ;;  %v1397_v63 = vld [vmem:[%s2216_s24 + $0x10] sm:$0xff]  ;;  %v618_v1 = vld [vmem:[#allocation2 + $0x8] sm:$0xff] }
 0x13b   : > { %v696_v30 = vpack.c.b16 %v685_v26, %v684_v25  ;;  %v693_v45 = vpack.c.b16 %v679_v42, %v678_v41  ;;  %v624_v51 = vld [vmem:[#allocation2 + $0x60] sm:$0xff]  ;;  %v1401_v0 = vld [vmem:[%s2216_s24 + $0x30] sm:$0xff]  ;;  %v619_v2 = vld [vmem:[#allocation2 + $0x48] sm:$0xff]  ;;  %v634_v5 = vpack.c.bf16 %v618_v1, %v618_v1 }
 0x13c   : > { %v697_v46 = vpack.c.b16 %v687_v44, %v686_v43  ;;  %v640_v55 = vpack.c.bf16 %v624_v51, %v624_v51  ;;  %v680_v57 = vunpack.c.l.b16 %v632_v53  ;;  %v681_v58 = vunpack.c.l.b16 %v633_v54  ;;  %v626_v3 = vld [vmem:[#allocation2 + $0x78] sm:$0xff]  ;;  %v627_v4 = vld [vmem:[#allocation2 + $0x28] sm:$0xff]  ;;  %v2264_v18 = vld [vmem:[%s2407_s12] ss:$0 sm:$0xff] }
 0x13d   : > { %891 = vmatpush.bf16.msra.mxu0 %v1407_v7  ;;  %1494 = vmatpush.bf16.msra.mxu2 %v1407_v7  ;;  %v689_v60 = vunpack.c.l.b16 %v641_v56  ;;  %v635_v6 = vpack.c.bf16 %v619_v2, %v619_v2  ;;  %v642_v7 = vpack.c.bf16 %v626_v3, %v626_v3  ;;  %v1398_v15 = vld [vmem:[%s2216_s24 + $0x18] sm:$0xff] }
 0x13e   : > { %940 = vmatpush.bf16.msra.mxu1 %v1415_v8  ;;  %1502 = vmatpush.bf16.msra.mxu3 %v1415_v8  ;;  %v688_v59 = vunpack.c.l.b16 %v640_v55  ;;  %v694_v61 = vpack.c.b16 %v681_v58, %v680_v57  ;;  %v643_v8 = vpack.c.bf16 %v627_v4, %v627_v4 }
 0x140   : > { %v698_v62 = vpack.c.b16 %v689_v60, %v688_v59  ;;  %v691_v12 = vunpack.c.l.b16 %v643_v8 }
 0x141   : > { %892 = vmatpush.bf16.msra.mxu0 %v1406_v9  ;;  %1495 = vmatpush.bf16.msra.mxu2 %v1406_v9  ;;  %v682_v9 = vunpack.c.l.b16 %v634_v5 }
 0x142   : > { %941 = vmatpush.bf16.msra.mxu1 %v1414_v10  ;;  %1503 = vmatpush.bf16.msra.mxu3 %v1414_v10  ;;  %v683_v10 = vunpack.c.l.b16 %v635_v6 }
 0x144   : > { %v695_v13 = vpack.c.b16 %v683_v10, %v682_v9 }
 0x145   : > { %893 = vmatpush.bf16.msra.mxu0 %v1405_v11  ;;  %1496 = vmatpush.bf16.msra.mxu2 %v1405_v11  ;;  %v690_v11 = vunpack.c.l.b16 %v642_v7 }
 0x146   : > { %942 = vmatpush.bf16.msra.mxu1 %v1413_v16  ;;  %1504 = vmatpush.bf16.msra.mxu3 %v1413_v16  ;;  %v1402_v16 = vld [vmem:[%s2216_s24 + $0x38] sm:$0xff] }
 0x147   : > { %v699_v14 = vpack.c.b16 %v691_v12, %v690_v11 }
 0x149   : > { %894 = vmatpush.bf16.msra.mxu0 %v1404_v21  ;;  %1497 = vmatpush.bf16.msra.mxu2 %v1404_v21 }
 0x14a   : > { %943 = vmatpush.bf16.msra.mxu1 %v1412_v22  ;;  %1505 = vmatpush.bf16.msra.mxu3 %v1412_v22 }
 0x14d   : > { %895 = vmatpush.bf16.msra.mxu0 %v1403_v27  ;;  %1498 = vmatpush.bf16.msra.mxu2 %v1403_v27 }
 0x14e   : > { %944 = vmatpush.bf16.msra.mxu1 %v1411_v28  ;;  %1506 = vmatpush.bf16.msra.mxu3 %v1411_v28 }
 0x150   : > { %896 = vmatmul.bf16.vlgmr.msra.gmra.mxu0 %v692_v29  ;;  %916 = vmatmul.bf16.vlgmr.msra.gmra.mxu2 %v696_v30 }
 0x151   : > { %945 = vmatmul.bf16.vlgmr.msra.gmra.mxu1 %v1395_v31  ;;  %965 = vmatmul.bf16.vlgmr.msra.gmra.mxu3 %v1399_v32 }
 0x160   : > { %901 = vmatmul.bf16.gmra.mxu0 %v693_v45  ;;  %921 = vmatmul.bf16.gmra.mxu2 %v697_v46 }
 0x161   : > { %950 = vmatmul.bf16.gmra.mxu1 %v1396_v47  ;;  %970 = vmatmul.bf16.gmra.mxu3 %v1400_v48 }
 0x170   : > { %906 = vmatmul.bf16.gmra.mxu0 %v694_v61  ;;  %926 = vmatmul.bf16.gmra.mxu2 %v698_v62 }
 0x171   : > { %955 = vmatmul.bf16.gmra.mxu1 %v1397_v63  ;;  %975 = vmatmul.bf16.gmra.mxu3 %v1401_v0 }
 0x180   : > { %911 = vmatmul.bf16.gmra.mxu0 %v695_v13  ;;  %931 = vmatmul.bf16.gmra.mxu2 %v699_v14 }
 0x181   : > { %960 = vmatmul.bf16.gmra.mxu1 %v1398_v15  ;;  %980 = vmatmul.bf16.gmra.mxu3 %v1402_v16 }
 0x1cd   : > { %v897_v17 = vpop.f32.mrf.mxu0 }
 0x1ce   : > { %v946_v19 = vpop.f32.mrf.mxu1  ;;  %v898_v20 = vadd.f32 %v2264_v18, %v897_v17 }
 0x1d0   : > { %v947_v24 = vadd.f32 %v946_v19, %v898_v20 }
 0x1d2   : > { %v986_v29 = vmax.f32 %v947_v24, 0.0 }
 0x1d3   : > { %v917_v21 = vpop.f32.mrf.mxu2 }
 0x1d4   : > { %v966_v22 = vpop.f32.mrf.mxu3  ;;  %v918_v27 = vadd.f32 %v2264_v18, %v917_v21 }
 0x1d5   : > { %v899_v23 = vpop.f32.mrf.mxu0 }
 0x1d6   : > { %v900_v25 = vadd.f32 %v2264_v18, %v899_v23  ;;  %v948_v26 = vpop.f32.mrf.mxu1  ;;  %v967_v32 = vadd.f32 %v966_v22, %v918_v27 }
 0x1d8   : > { %v949_v28 = vadd.f32 %v948_v26, %v900_v25  ;;  %v994_v39 = vmax.f32 %v967_v32, 0.0 }
 0x1da   : > { %v987_v30 = vmax.f32 %v949_v28, 0.0 }
 0x1db   : > { %v919_v31 = vpop.f32.mrf.mxu2 }
 0x1dc   : > { %v1423_v33 = vpack.c.bf16 %v987_v30, %v986_v29  ;;  %v920_v34 = vadd.f32 %v2264_v18, %v919_v31  ;;  %v968_v35 = vpop.f32.mrf.mxu3 }
 0x1dd   : > { %v902_v36 = vpop.f32.mrf.mxu0 }
 0x1de   : > { %1424 = vst [vmem:[%s2233_s23] sm:$0xff] %v1423_v33   ;;  %v969_v37 = vadd.f32 %v968_v35, %v920_v34  ;;  %v951_v38 = vpop.f32.mrf.mxu1  ;;  %v903_v42 = vadd.f32 %v2264_v18, %v902_v36 }
 0x1e0   : > { %v995_v40 = vmax.f32 %v969_v37, 0.0  ;;  %v952_v46 = vadd.f32 %v951_v38, %v903_v42 }
 0x1e2   : > { %v1443_v41 = vpack.c.bf16 %v995_v40, %v994_v39  ;;  %v988_v51 = vmax.f32 %v952_v46, 0.0 }
 0x1e3   : > { %v922_v43 = vpop.f32.mrf.mxu2 }
 0x1e4   : > { %1463 = vst [vmem:[%s2233_s23 + $0x20] sm:$0xff] %v1443_v41   ;;  %v971_v44 = vpop.f32.mrf.mxu3  ;;  %v923_v49 = vadd.f32 %v2264_v18, %v922_v43 }
 0x1e5   : > { %v904_v45 = vpop.f32.mrf.mxu0 }
 0x1e6   : > { %v905_v47 = vadd.f32 %v2264_v18, %v904_v45  ;;  %v953_v48 = vpop.f32.mrf.mxu1  ;;  %v972_v54 = vadd.f32 %v971_v44, %v923_v49 }
 0x1e8   : > { %v954_v50 = vadd.f32 %v953_v48, %v905_v47  ;;  %v996_v61 = vmax.f32 %v972_v54, 0.0 }
 0x1ea   : > { %v989_v52 = vmax.f32 %v954_v50, 0.0 }
 0x1eb   : > { %v924_v53 = vpop.f32.mrf.mxu2 }
 0x1ec   : > { %v1428_v55 = vpack.c.bf16 %v989_v52, %v988_v51  ;;  %v925_v56 = vadd.f32 %v2264_v18, %v924_v53  ;;  %v973_v57 = vpop.f32.mrf.mxu3 }
 0x1ed   : > { %v907_v58 = vpop.f32.mrf.mxu0 }
 0x1ee   : > { %1460 = vst [vmem:[%s2233_s23 + $0x8] sm:$0xff] %v1428_v55   ;;  %v974_v59 = vadd.f32 %v973_v57, %v925_v56  ;;  %v956_v60 = vpop.f32.mrf.mxu1  ;;  %v908_v0 = vadd.f32 %v2264_v18, %v907_v58 }
 0x1f0   : > { %v997_v62 = vmax.f32 %v974_v59, 0.0  ;;  %v957_v4 = vadd.f32 %v956_v60, %v908_v0 }
 0x1f2   : > { %v1448_v63 = vpack.c.bf16 %v997_v62, %v996_v61  ;;  %v990_v9 = vmax.f32 %v957_v4, 0.0 }
 0x1f3   : > { %v927_v1 = vpop.f32.mrf.mxu2 }
 0x1f4   : > { %1464 = vst [vmem:[%s2233_s23 + $0x28] sm:$0xff] %v1448_v63   ;;  %v976_v2 = vpop.f32.mrf.mxu3  ;;  %v928_v7 = vadd.f32 %v2264_v18, %v927_v1 }
 0x1f5   : > { %v909_v3 = vpop.f32.mrf.mxu0 }
 0x1f6   : > { %v910_v5 = vadd.f32 %v2264_v18, %v909_v3  ;;  %v958_v6 = vpop.f32.mrf.mxu1  ;;  %v977_v12 = vadd.f32 %v976_v2, %v928_v7 }
 0x1f8   : > { %v959_v8 = vadd.f32 %v958_v6, %v910_v5  ;;  %v998_v20 = vmax.f32 %v977_v12, 0.0 }
 0x1fa   : > { %v991_v10 = vmax.f32 %v959_v8, 0.0 }
 0x1fb   : > { %v929_v11 = vpop.f32.mrf.mxu2 }
 0x1fc   : > { %v1433_v13 = vpack.c.bf16 %v991_v10, %v990_v9  ;;  %v930_v14 = vadd.f32 %v2264_v18, %v929_v11  ;;  %v978_v15 = vpop.f32.mrf.mxu3 }
 0x1fd   : > { %v912_v16 = vpop.f32.mrf.mxu0 }
 0x1fe   : > { %1461 = vst [vmem:[%s2233_s23 + $0x10] sm:$0xff] %v1433_v13   ;;  %v979_v17 = vadd.f32 %v978_v15, %v930_v14  ;;  %v961_v19 = vpop.f32.mrf.mxu1  ;;  %v913_v23 = vadd.f32 %v2264_v18, %v912_v16 }
 0x200   : > { %v999_v21 = vmax.f32 %v979_v17, 0.0  ;;  %v962_v27 = vadd.f32 %v961_v19, %v913_v23 }
 0x202   : > { %v1453_v22 = vpack.c.bf16 %v999_v21, %v998_v20  ;;  %v992_v32 = vmax.f32 %v962_v27, 0.0 }
 0x203   : > { %v932_v24 = vpop.f32.mrf.mxu2 }
 0x204   : > { %1465 = vst [vmem:[%s2233_s23 + $0x30] sm:$0xff] %v1453_v22   ;;  %v981_v25 = vpop.f32.mrf.mxu3  ;;  %v933_v30 = vadd.f32 %v2264_v18, %v932_v24 }
 0x205   : > { %v914_v26 = vpop.f32.mrf.mxu0 }
 0x206   : > { %v915_v28 = vadd.f32 %v2264_v18, %v914_v26  ;;  %v963_v29 = vpop.f32.mrf.mxu1  ;;  %v982_v35 = vadd.f32 %v981_v25, %v933_v30 }
 0x208   : > { %v964_v31 = vadd.f32 %v963_v29, %v915_v28  ;;  %v1000_v40 = vmax.f32 %v982_v35, 0.0 }
 0x20a   : > { %v993_v33 = vmax.f32 %v964_v31, 0.0 }
 0x20b   : > { %v934_v34 = vpop.f32.mrf.mxu2 }
 0x20c   : > { %v1438_v36 = vpack.c.bf16 %v993_v33, %v992_v32  ;;  %v935_v37 = vadd.f32 %v2264_v18, %v934_v34  ;;  %v983_v38 = vpop.f32.mrf.mxu3 }
 0x20e   : > { %1462 = vst [vmem:[%s2233_s23 + $0x18] sm:$0xff] %v1438_v36   ;;  %v984_v39 = vadd.f32 %v983_v38, %v935_v37 }
 0x210   : > { %v1001_v41 = vmax.f32 %v984_v39, 0.0 }
 0x212   : > { %v1458_v42 = vpack.c.bf16 %v1001_v41, %v1000_v40 }
 0x214   : > { %1466 = vst [vmem:[%s2233_s23 + $0x38] sm:$0xff] %v1458_v42  }
 0x215 PF: > { %s2408_s10 = sld [smem:[#allocation20_spill]]  ;;  %s1047_s17 = sshll.u32 %s2233_s23, 4  ;;  %s1048_s17 = int_to_ptr.vmem [resolvable:$true] %s1047_s17 }
 0x216   : > { %s2410_s1 = sld [smem:[#allocation30_spill]]  ;;  %s1035_s13 = scalar_lea.sflag [#allocation5], %s304_s16 }
 0x21b   : > { %s1419_s15 = sshll.u32 %s2408_s10, 6 }
 0x21c   : > { %s1046_s28 = scalar_lea.hbm %s2410_s1, %s1419_s15  ;;  %s1802_s26 = scalar_lea.hbm %s2410_s1, 128 }
 0x21d   : > { %s1049_s21 = sshll.u32 %s1046_s28, 4  ;;  %s1050_s21 = int_to_ptr.hbm [resolvable:$true] %s1049_s21 }
 0x21e   : > { %s1796_s5 = sshra.s32 %s1050_s21, 4  ;;  %s1797_s5 = int_to_ptr.hbm [resolvable:$true] %s1796_s5 }
 0x21f   : > { %s1798_s3 = scalar_lea.hbm %s1797_s5, 64  ;;  %p1803_p1 = scmp.lt.s32.totalorder %s1797_s5, %s2410_s1 }
 0x220   : > { %p1799_p8 = scmp.ne.s32.totalorder %s1797_s5, %s1798_s3  ;;  %p1804_p2 = scmp.lt.s32.totalorder %s1802_s26, %s1798_s3 }
 0x222   : > { %p1800_p10 = pnand %p1799_p8, %p2067_p6  ;;  %p1805_p5 = por %p1804_p2, %p1803_p1 }
 0x224   : > { %p1801_p13 = pneg %p1800_p10 }
 0x226   : > { %p1806_p9 = pnand %p1805_p5, %p1801_p13 }
 0x228   : > { %1809 = shalt.err (!%p1806_p9)
}
 0x229   : > { %s1947_s16 = smov 64   ;;  %s1948_s23 = smov 4  }
 0x22a   : > { %1518 = dma.vmem_to_hbm [thread:$0]  (%p2067_p6), %s1048_s17, 1024, %s1050_s21, %s1035_s13, %s1947_s16, %s1947_s16, %s1948_s23  }
 0x22b PF: > { %s2411_s7 = sld [smem:[#allocation17_spill]]  ;;  %p1541_p12 = scmp.ge.s32.totalorder %s1940_s6, 2 }
 0x22c   : > { %s2412_s12 = sld [smem:[#allocation22_spill]] }
 0x231   : > { %s1064_s10 = sand.u32 1, %s2411_s7  }
 0x232   : > { %p2413_p3 = scmp.ne.s32.totalorder %s2412_s12, 0  ;;  %s1065_s15 = scalar_lea.sflag [#allocation5], %s1064_s10 }
 0x234   : > { %p1535_p4 = pnand %p1541_p12, %p2413_p3 }
 0x236   : > { %p1536_p11 = pneg %p1535_p4 }
 0x238   : > { %1883 = dma.done.wait (%p1536_p11), %s1065_s15, 1024  }
 0x239   : > { %1885 = vsyncadd (%p1536_p11), %s1065_s15, 4294966272  ;;  %s25_s6 = sadd.s32 1, %s1940_s6   ;;  %s2415_s9 = sld [smem:[#allocation18_spill]] }
 0x23a   : > { %p2312_p0 = scmp.ge.s32.totalorder %s25_s6, 8   ;;  %s2416_s23 = sld [smem:[#allocation26_spill]] }
 0x23b   : > { %s2417_s14 = sld [smem:[#allocation19_spill]]  ;;  %s2422_s18 = smov %s1892_s19 }
 0x23c   : > { %s2418_s26 = sld [smem:[#allocation25_spill]]  ;;  %s2423_s19 = smov %s1896_s20 }
 0x23d   : > { %s2419_s17 = sld [smem:[#allocation23_spill]]  ;;  %s2424_s20 = smov %s2178_s8 }
 0x23e   : > { %s2420_s13 = sld [smem:[#allocation24_spill]]  ;;  %s2425_s21 = smov %s1904_s22 }
 0x23f   : > { %s2426_s22 = smov %s2415_s9  ;;  %s2427_s24 = smov %s1916_s25 }
 0x240   : > { %s2429_s27 = smov %s1932_s29  ;;  %s2430_s28 = smov %s1936_s30 }
 0x241   : > { %s2428_s25 = smov %s2417_s14  ;;  %24 = sbr.rel (!%p2312_p0) target bundleno = 18 (0x12), region = 121 }
 0x243   : > { %s2431_s29 = smov %s2419_s17 }
 0x244   : > { %s2432_s30 = smov %s2420_s13 }
 0x246   :  { %1071 = vsyncpa [#allocation4], 1 }
 0x247   :  { %1073 = vsyncpa [#allocation4 + $0x1], 1 }
 0x248   :  { %1074 = vsyncpa [#allocation7], 1 }
 0x249   :  { %1076 = vsyncpa [#allocation7 + $0x1], 1 }
 0x24a   :  { %1077 = vsyncpa [#allocation10], 1 }
 0x24b   :  { %1078 = vsyncpa [#allocation5], 1 }
 0x24c   :  { %1080 = vsyncpa [#allocation5 + $0x1], 1 }

</bundles_post_ra>
